<compile_context>
chip_gen: v5e
topology: v5e:2x2
jax: 0.10.0
libtpu: 0.0.40
codegen_flags: <defaults>
</compile_context>

<pallas_src>
import functools
import math

import jax
import jax.numpy as jnp
from jax.experimental import pallas as pl
from jax.experimental.pallas import tpu as pltpu


@functools.lru_cache(maxsize=None)
def _vmem_limit_bytes() -> int:
    """Per-generation scoped-VMEM request (v7x only has 64 MiB per TensorCore)."""
    try:
        cap = int(pltpu.get_tpu_info().vmem_capacity_bytes)
    except Exception:
        cap = 64 * 1024 * 1024  # assume the smallest (v7x-like) budget
    if cap <= 64 * 1024 * 1024:
        return 40 * 1024 * 1024          # v7x: leave headroom for internal scratch
    return 64 * 1024 * 1024              # v5e / v6e: 128 MiB physical


def _pick_tile(dim: int, target: int, align: int) -> int:
    """Largest `align`-multiple divisor of `dim` that is <= target, else full dim."""
    if dim <= target:
        return dim
    t = (target // align) * align
    while t >= align:
        if dim % t == 0:
            return t
        t -= align
    return dim  # full extent is always a legal block shape


# ----------------------------------------------------------------------------
# Kernel 1: tiled, pipelined Linear (x @ W + b), bf16 MXU operands, f32 acc.
# ----------------------------------------------------------------------------
def _linear_kernel(x_ref, w_ref, b_ref, o_ref, acc_ref):
    @pl.when(pl.program_id(2) == 0)
    def _():
        acc_ref[...] = jnp.zeros_like(acc_ref)

    # bf16 is the native MXU dtype on v5e/v6e/v7x; accumulate in f32.
    acc_ref[...] += jnp.dot(x_ref[...].astype(jnp.bfloat16),
                            w_ref[...].astype(jnp.bfloat16),
                            preferred_element_type=jnp.float32)

    @pl.when(pl.program_id(2) == pl.num_programs(2) - 1)
    def _():
        o_ref[...] = (acc_ref[...] + b_ref[...].astype(jnp.float32)
                      ).astype(o_ref.dtype)


def _linear_tiles(M: int, K: int, N: int):
    # Keep the whole weight VMEM-resident when small: with tn=N, tk=K its block
    # index is constant so it is DMA'd once instead of once per M-tile.
    if K * N * 4 <= 6 * 1024 * 1024:
        tk, tn = K, N
    else:
        tk = _pick_tile(K, 512, 128)
        tn = _pick_tile(N, 256, 128)
    # MXU/lane-aligned M tiles; fall back to full M only when M < 128.
    tm = M if M < 128 else _pick_tile(M, 256, 128)
    return tm, tk, tn


def linear(x2d: jax.Array, w: jax.Array, b: jax.Array) -> jax.Array:
    """x2d: (M, K), w: (K, N), b: (N,) -> (M, N)."""
    M, K = x2d.shape
    N = w.shape[1]
    tm, tk, tn = _linear_tiles(M, K, N)
    grid = (M // tm, N // tn, K // tk)
    return pl.pallas_call(
        _linear_kernel,
        out_shape=jax.ShapeDtypeStruct((M, N), x2d.dtype),
        grid=grid,
        in_specs=[
            pl.BlockSpec((tm, tk), lambda i, j, k: (i, k)),
            pl.BlockSpec((tk, tn), lambda i, j, k: (k, j)),
            pl.BlockSpec((1, tn), lambda i, j, k: (0, j)),
        ],
        out_specs=pl.BlockSpec((tm, tn), lambda i, j, k: (i, j)),
        scratch_shapes=[pltpu.VMEM((tm, tn), jnp.float32)],
        compiler_params=pltpu.CompilerParams(
            dimension_semantics=("parallel", "parallel", "arbitrary"),
            vmem_limit_bytes=_vmem_limit_bytes()),
    )(x2d, w, b.reshape(1, N))


# ----------------------------------------------------------------------------
# Kernel 2: flash-style online-softmax attention.
#   * causal: masked-out KV blocks are skipped for compute (pl.when) AND their
#     DMA is elided (index_map clamping, see _clamped_kv_block).
#   * the causal mask itself only runs on blocks intersecting the diagonal.
#   * bf16 MXU operands, f32 softmax stats / accumulator.
# Block refs (leading dims squeezed): q (tq, hs), k/v (tk, hs), o (tq, hs).
# ----------------------------------------------------------------------------
def _flash_attn_kernel(q_ref, k_ref, v_ref, o_ref, m_sc, l_sc, acc_sc,
                       *, scale: float, causal: bool, tq: int, tk: int,
                       q_axis: int, kv_axis: int):
    qi = pl.program_id(q_axis)
    ki = pl.program_id(kv_axis)

    @pl.when(ki == 0)
    def _init():
        m_sc[...] = jnp.full_like(m_sc, -jnp.inf)
        l_sc[...] = jnp.zeros_like(l_sc)
        acc_sc[...] = jnp.zeros_like(acc_sc)

    def _accumulate(apply_mask):
        # Fold 1/sqrt(hs) into q (tq*hs once) instead of scaling the (tq,tk) scores.
        q = (q_ref[...].astype(jnp.float32) * scale).astype(jnp.bfloat16)
        k = k_ref[...].astype(jnp.bfloat16)
        # scores (tq, tk): contract over head dim without materializing k.T
        s = jax.lax.dot_general(q, k, (((1,), (1,)), ((), ())),
                                preferred_element_type=jnp.float32)
        if apply_mask:
            row = qi * tq + jax.lax.broadcasted_iota(jnp.int32, (tq, tk), 0)
            col = ki * tk + jax.lax.broadcasted_iota(jnp.int32, (tq, tk), 1)
            s = jnp.where(col <= row, s, -jnp.inf)
        m_prev = m_sc[...]
        m_new = jnp.maximum(m_prev, jnp.max(s, axis=-1, keepdims=True))
        alpha = jnp.exp(m_prev - m_new)
        p = jnp.exp(s - m_new)
        l_sc[...] = alpha * l_sc[...] + jnp.sum(p, axis=-1, keepdims=True)
        acc_sc[...] = alpha * acc_sc[...] + jnp.dot(
            p.astype(jnp.bfloat16), v_ref[...].astype(jnp.bfloat16),
            preferred_element_type=jnp.float32)
        m_sc[...] = m_new

    if causal:
        # Block intersects or lies below the diagonal -> must be processed.
        block_needed = ki * tk <= qi * tq + (tq - 1)
        # Block lies entirely at/below the diagonal -> no mask needed.
        block_fully_unmasked = (ki * tk + (tk - 1)) <= qi * tq
        pl.when(block_needed & block_fully_unmasked)(
            lambda: _accumulate(False))
        pl.when(block_needed & jnp.logical_not(block_fully_unmasked))(
            lambda: _accumulate(True))
    else:
        _accumulate(False)

    @pl.when(ki == pl.num_programs(kv_axis) - 1)
    def _finalize():
        # Exact divide: runs once per output block, keeps accuracy tight.
        o_ref[...] = (acc_sc[...] / l_sc[...]).astype(o_ref.dtype)


def _attn_tiles(T: int):
    tq = _pick_tile(T, 256, 8)
    tk = _pick_tile(T, 512, 8)
    return tq, tk


def _clamped_kv_block(qi, ki, tq: int, tk: int, causal: bool):
    """KV block index for the k/v index_maps.  For causal attention, clamp to the
    last block that intersects the diagonal so fully-masked steps repeat the
    previous block index and Pallas elides the HBM fetch."""
    if not causal:
        return ki
    last_needed = (qi * tq + (tq - 1)) // tk
    return jnp.minimum(ki, last_needed)


def _attention_fused(qkv: jax.Array, B: int, T: int, C: int, nh: int,
                     causal: bool, out_dtype) -> jax.Array:
    """Reads q/k/v straight out of the (B, T, 3C) QKV activation (head split fused
    into the index_maps) and writes (B, T, C) directly.  Requires hs % 128 == 0."""
    hs = C // nh
    tq, tk = _attn_tiles(T)
    nq, nk = T // tq, T // tk
    scale = 1.0 / math.sqrt(hs)
    kern = functools.partial(_flash_attn_kernel, scale=scale, causal=causal,
                             tq=tq, tk=tk, q_axis=2, kv_axis=3)
    q_spec = pl.BlockSpec((None, tq, hs), lambda b, h, qi, ki: (b, qi, h))
    k_spec = pl.BlockSpec(
        (None, tk, hs),
        lambda b, h, qi, ki: (b, _clamped_kv_block(qi, ki, tq, tk, causal), nh + h))
    v_spec = pl.BlockSpec(
        (None, tk, hs),
        lambda b, h, qi, ki: (b, _clamped_kv_block(qi, ki, tq, tk, causal), 2 * nh + h))
    o_spec = pl.BlockSpec((None, tq, hs), lambda b, h, qi, ki: (b, qi, h))
    return pl.pallas_call(
        kern,
        out_shape=jax.ShapeDtypeStruct((B, T, C), out_dtype),
        grid=(B, nh, nq, nk),
        in_specs=[q_spec, k_spec, v_spec],
        out_specs=o_spec,
        scratch_shapes=[pltpu.VMEM((tq, 1), jnp.float32),
                        pltpu.VMEM((tq, 1), jnp.float32),
                        pltpu.VMEM((tq, hs), jnp.float32)],
        compiler_params=pltpu.CompilerParams(
            dimension_semantics=("parallel", "parallel", "parallel", "arbitrary"),
            vmem_limit_bytes=_vmem_limit_bytes()),
    )(qkv, qkv, qkv)


def _attention_split(qkv: jax.Array, B: int, T: int, C: int, nh: int,
                     causal: bool, out_dtype) -> jax.Array:
    """Fallback for lane-sparse head sizes (hs % 128 != 0): explicit head split so
    every kernel block keeps a legal, full-extent last dimension."""
    hs = C // nh
    q, k, v = qkv[..., :C], qkv[..., C:2 * C], qkv[..., 2 * C:]

    def split_heads(t):
        return t.reshape(B, T, nh, hs).transpose(0, 2, 1, 3).reshape(B * nh, T, hs)

    qh, kh, vh = split_heads(q), split_heads(k), split_heads(v)
    BH = B * nh
    tq, tk = _attn_tiles(T)
    nq, nk = T // tq, T // tk
    scale = 1.0 / math.sqrt(hs)
    kern = functools.partial(_flash_attn_kernel, scale=scale, causal=causal,
                             tq=tq, tk=tk, q_axis=1, kv_axis=2)
    q_spec = pl.BlockSpec((None, tq, hs), lambda bh, qi, ki: (bh, qi, 0))
    kv_spec = pl.BlockSpec(
        (None, tk, hs),
        lambda bh, qi, ki: (bh, _clamped_kv_block(qi, ki, tq, tk, causal), 0))
    o_spec = pl.BlockSpec((None, tq, hs), lambda bh, qi, ki: (bh, qi, 0))
    yh = pl.pallas_call(
        kern,
        out_shape=jax.ShapeDtypeStruct((BH, T, hs), out_dtype),
        grid=(BH, nq, nk),
        in_specs=[q_spec, kv_spec, kv_spec],
        out_specs=o_spec,
        scratch_shapes=[pltpu.VMEM((tq, 1), jnp.float32),
                        pltpu.VMEM((tq, 1), jnp.float32),
                        pltpu.VMEM((tq, hs), jnp.float32)],
        compiler_params=pltpu.CompilerParams(
            dimension_semantics=("parallel", "parallel", "arbitrary"),
            vmem_limit_bytes=_vmem_limit_bytes()),
    )(qh, kh, vh)
    return yh.reshape(B, nh, T, hs).transpose(0, 2, 1, 3).reshape(B, T, C)


# ----------------------------------------------------------------------------
# Module wrapper (parameters + forward), mirroring the PyTorch SelfAttention.
# ----------------------------------------------------------------------------
def init_self_attention_params(key, embedding_dim: int, bias: bool = True):
    C = embedding_dim
    k1, k2, k3, k4 = jax.random.split(key, 4)
    std = 1.0 / math.sqrt(C)
    params = {
        # stored as (in, out) so forward is x @ W + b (PyTorch does x @ W.T + b)
        "w_qkv": jax.random.uniform(k1, (C, 3 * C), jnp.float32, -std, std),
        "b_qkv": (jax.random.uniform(k2, (3 * C,), jnp.float32, -std, std)
                  if bias else jnp.zeros((3 * C,), jnp.float32)),
        "w_proj": jax.random.uniform(k3, (C, C), jnp.float32, -std, std),
        "b_proj": (jax.random.uniform(k4, (C,), jnp.float32, -std, std)
                   if bias else jnp.zeros((C,), jnp.float32)),
    }
    return params


def self_attention_forward(params, x: jax.Array, num_heads: int,
                           causal: bool) -> jax.Array:
    B, T, C = x.shape
    nh = num_heads
    hs = C // nh

    # QKV projection (tiled Pallas linear kernel), kept fused as (B, T, 3C)
    qkv = linear(x.reshape(B * T, C), params["w_qkv"], params["b_qkv"])
    qkv = qkv.reshape(B, T, 3 * C)

    # flash attention; head split fused into index_maps when lane-dense
    if hs % 128 == 0:
        y = _attention_fused(qkv, B, T, C, nh, causal, x.dtype)
    else:
        y = _attention_split(qkv, B, T, C, nh, causal, x.dtype)

    # output projection (tiled Pallas linear kernel)
    y = linear(y.reshape(B * T, C), params["w_proj"], params["b_proj"])
    return y.reshape(B, T, C)


# ----------------------------------------------------------------------------
# Pure-JAX f32 reference for verification.
# ----------------------------------------------------------------------------
def reference_forward(params, x, num_heads, causal):
    B, T, C = x.shape
    nh, hs = num_heads, C // num_heads
    qkv = x @ params["w_qkv"] + params["b_qkv"]
    q, k, v = jnp.split(qkv, 3, axis=-1)

    def sh(t):
        return t.reshape(B, T, nh, hs).transpose(0, 2, 1, 3)

    q, k, v = sh(q), sh(k), sh(v)
    s = jnp.einsum("bhqd,bhkd->bhqk", q, k) / math.sqrt(hs)
    if causal:
        mask = jnp.tril(jnp.ones((T, T), bool))
        s = jnp.where(mask, s, -jnp.inf)
    p = jax.nn.softmax(s, axis=-1)
    y = jnp.einsum("bhqk,bhkd->bhqd", p, v)
    y = y.transpose(0, 2, 1, 3).reshape(B, T, C)
    return y @ params["w_proj"] + params["b_proj"]


def _run_and_check(B, T, C, NH, causal, key):
    kx, kp = jax.random.split(key)
    x = jax.random.normal(kx, (B, T, C), jnp.float32)
    params = init_self_attention_params(kp, embedding_dim=C, bias=True)
    y = self_attention_forward(params, x, num_heads=NH, causal=causal)
    y = jax.block_until_ready(y)
    y_ref = reference_forward(params, x, NH, causal)
    assert y.shape == (B, T, C)
    # tolerance accounts for bf16 MXU operands vs the pure-f32 reference
    max_err = float(jnp.max(jnp.abs(y - y_ref)))
    mean_err = float(jnp.mean(jnp.abs(y - y_ref)))
    assert jnp.allclose(y, y_ref, atol=5e-2, rtol=5e-2), \
        f"mismatch vs reference for shape {(B, T, C, NH)}: max_err={max_err}"
    assert mean_err < 1e-2, f"mean error too large: {mean_err}"


if __name__ == "__main__":
    key = jax.random.PRNGKey(0)
    k1, k2 = jax.random.split(key)

    # Config 1 (spec-sized toy): hs = 8 -> lane-sparse fallback path.
    _run_and_check(B=2, T=8, C=32, NH=4, causal=True, key=k1)

    # Config 2: hs = 128 -> fused head-split path, causal DMA-elided KV blocks,
    # VMEM-resident weights in linear().
    _run_and_check(B=1, T=256, C=256, NH=2, causal=True, key=k2)

    print("KERNEL_OK")
</pallas_src>

<mosaic_0001>
module attributes {stable_mosaic.version = 11 : i64} {
  func.func @_linear_kernel(%arg0: i32, %arg1: i32, %arg2: i32, %arg3: memref<16x32xf32, #tpu.memory_space<vmem>>, %arg4: memref<32x96xf32, #tpu.memory_space<vmem>>, %arg5: memref<1x96xf32, #tpu.memory_space<vmem>>, %arg6: memref<16x96xf32, #tpu.memory_space<vmem>>, %arg7: memref<16x96xf32, #tpu.memory_space<vmem>>) attributes {dimension_semantics = [#tpu.dimension_semantics<parallel>, #tpu.dimension_semantics<parallel>, #tpu.dimension_semantics<arbitrary>], iteration_bounds = array<i64: 1, 1, 1>, scalar_prefetch = 0 : i64, scratch_operands = 1 : i64, tpu.core_type = #tpu.core_type<tc>, window_params = [{transform_indices = @transform_0, window_bounds = array<i64: 16, 32>}, {transform_indices = @transform_1, window_bounds = array<i64: 32, 96>}, {transform_indices = @transform_2, window_bounds = array<i64: 1, 96>}, {transform_indices = @transform_3, window_bounds = array<i64: 16, 96>}]} {
    %c0_i32 = arith.constant 0 : i32
    %0 = arith.cmpi eq, %arg2, %c0_i32 : i32
    %1 = arith.extui %0 : i1 to i32
    %c0_i32_0 = arith.constant 0 : i32
    %2 = arith.cmpi ne, %1, %c0_i32_0 : i32
    scf.if %2 {
      %cst_10 = arith.constant 0.000000e+00 : f32
      %14 = vector.broadcast %cst_10 : f32 to vector<16x96xf32>
      %c0_11 = arith.constant 0 : index
      %c0_12 = arith.constant 0 : index
      %15 = vector.load %arg7[%c0_11, %c0_12] : memref<16x96xf32, #tpu.memory_space<vmem>>, vector<16x96xf32>
      tpu.vector_store %arg7[%c0_11, %c0_12], %14 {strides = array<i32>} : memref<16x96xf32, #tpu.memory_space<vmem>>, vector<16x96xf32>,
    } else {
    }
    %c0 = arith.constant 0 : index
    %c0_1 = arith.constant 0 : index
    %3 = vector.load %arg7[%c0, %c0_1] : memref<16x96xf32, #tpu.memory_space<vmem>>, vector<16x96xf32>
    %c0_2 = arith.constant 0 : index
    %c0_3 = arith.constant 0 : index
    %4 = vector.load %arg3[%c0_2, %c0_3] : memref<16x32xf32, #tpu.memory_space<vmem>>, vector<16x32xf32>
    %5 = arith.truncf %4 : vector<16x32xf32> to vector<16x32xbf16>
    %c0_4 = arith.constant 0 : index
    %c0_5 = arith.constant 0 : index
    %6 = vector.load %arg4[%c0_4, %c0_5] : memref<32x96xf32, #tpu.memory_space<vmem>>, vector<32x96xf32>
    %7 = arith.truncf %6 : vector<32x96xf32> to vector<32x96xbf16>
    %cst = arith.constant dense<0.000000e+00> : vector<16x96xf32>
    %8 = tpu.matmul %5, %7, %cst {dimension_numbers = #tpu.dot_dimension_numbers<[1], [0], [0], [1], [0, 0, 1, 1], [], []>} : vector<16x32xbf16>, vector<32x96xbf16>, vector<16x96xf32> -> vector<16x96xf32>
    %9 = arith.addf %3, %8 : vector<16x96xf32>
    %c0_6 = arith.constant 0 : index
    %c0_7 = arith.constant 0 : index
    %10 = vector.load %arg7[%c0_6, %c0_7] : memref<16x96xf32, #tpu.memory_space<vmem>>, vector<16x96xf32>
    tpu.vector_store %arg7[%c0_6, %c0_7], %9 {strides = array<i32>} : memref<16x96xf32, #tpu.memory_space<vmem>>, vector<16x96xf32>,
    %c0_i32_8 = arith.constant 0 : i32
    %11 = arith.cmpi eq, %arg2, %c0_i32_8 : i32
    %12 = arith.extui %11 : i1 to i32
    %c0_i32_9 = arith.constant 0 : i32
    %13 = arith.cmpi ne, %12, %c0_i32_9 : i32
    scf.if %13 {
      %c0_10 = arith.constant 0 : index
      %c0_11 = arith.constant 0 : index
      %14 = vector.load %arg7[%c0_10, %c0_11] : memref<16x96xf32, #tpu.memory_space<vmem>>, vector<16x96xf32>
      %c0_12 = arith.constant 0 : index
      %c0_13 = arith.constant 0 : index
      %15 = vector.load %arg5[%c0_12, %c0_13] : memref<1x96xf32, #tpu.memory_space<vmem>>, vector<1x96xf32>
      %16 = vector.broadcast %15 : vector<1x96xf32> to vector<16x96xf32>
      %17 = arith.addf %14, %16 : vector<16x96xf32>
      %c0_14 = arith.constant 0 : index
      %c0_15 = arith.constant 0 : index
      %18 = vector.load %arg6[%c0_14, %c0_15] : memref<16x96xf32, #tpu.memory_space<vmem>>, vector<16x96xf32>
      tpu.vector_store %arg6[%c0_14, %c0_15], %17 {strides = array<i32>} : memref<16x96xf32, #tpu.memory_space<vmem>>, vector<16x96xf32>,
    } else {
    }
    return
  }
  func.func @transform_0(%arg0: i32, %arg1: i32, %arg2: i32) -> (i32, i32) {
    %c0_i32 = arith.constant 0 : i32
    return %arg0, %arg2 : i32, i32
  }
  func.func @transform_1(%arg0: i32, %arg1: i32, %arg2: i32) -> (i32, i32) {
    %c0_i32 = arith.constant 0 : i32
    return %arg2, %arg1 : i32, i32
  }
  func.func @transform_2(%arg0: i32, %arg1: i32, %arg2: i32) -> (i32, i32) {
    %c0_i32 = arith.constant 0 : i32
    %c0_i32_0 = arith.constant 0 : i32
    return %c0_i32, %arg1 : i32, i32
  }
  func.func @transform_3(%arg0: i32, %arg1: i32, %arg2: i32) -> (i32, i32) {
    %c0_i32 = arith.constant 0 : i32
    return %arg0, %arg1 : i32, i32
  }
}

</mosaic_0001>

<bundles_post_ra>
// kernel: tpu_custom_call.1
= control target key start
LH: loop header
LB: loop body
LE: loop exit
PB: predicated region body
PF: predicated region fallthrough
CT: control target
= control target key end

     0   :  { %8 = vsyncpa [#allocation4], 0  ;;  %s261_s0 = inlined_call_operand.hbm [shape: f32[16,32], index: 0, kind: input, shape index: {}]   ;;  %s262_s1 = inlined_call_operand.hbm [shape: f32[32,96], index: 1, kind: input, shape index: {}]   ;;  %s263_s2 = inlined_call_operand.vmem [shape: f32[1,96], index: 2, kind: input, shape index: {}]   ;;  %s264_s3 = inlined_call_operand.hbm [shape: f32[16,96], index: 3, kind: output, shape index: {}]  }
   0x1   :  { %9 = vsyncpa [#allocation7], 0 }
   0x2   :  { %10 = vsyncpa [#allocation5], 0  ;;  %s15_s14 = sshll.u32 %s261_s0, 4  ;;  %s208_s15 = smov [#allocation3]   ;;  %s16_s14 = int_to_ptr.hbm [resolvable:$true] %s15_s14 }
   0x3   :  { %s17_s16 = sshll.u32 %s208_s15, 4  ;;  %s28_s19 = sshll.u32 %s262_s1, 4  ;;  %s18_s16 = int_to_ptr.vmem [resolvable:$true] %s17_s16  ;;  %s29_s19 = int_to_ptr.hbm [resolvable:$true] %s28_s19 }
   0x4   :  { %s209_s20 = smov 128   ;;  %s210_s21 = smov 8  }
   0x5   :  { %23 = dma.hbm_to_vmem [thread:$0]  %s16_s14, 256, %s18_s16, [#allocation4], %s209_s20, %s209_s20, %s210_s21  }
   0x6   :  { %s211_s22 = smov [#allocation6]  }
   0x7   :  { %s30_s23 = sshll.u32 %s211_s22, 4  ;;  %s31_s23 = int_to_ptr.vmem [resolvable:$true] %s30_s23 }
   0x8   :  { %36 = dma.hbm_to_vmem [thread:$0]  %s29_s19, 512, %s31_s23, [#allocation7], %s209_s20, %s209_s20, %s210_s21  }
   0x9   :  { %202 = dma.done.wait [#allocation4], 256  }
   0xa   :  { %203 = vsyncadd [#allocation4], 4294967040 }
   0xb   :  { %204 = dma.done.wait [#allocation7], 512  }
   0xc   :  { %205 = vsyncadd [#allocation7], 4294966784  ;;  %vm52_vm0 = vcmask 785408   ;;  %v212_v0 = vmov 0.0   ;;  %v62_v1 = vld [vmem:[#allocation6 + $0x10] sm:$0xff]  ;;  %v63_v2 = vld [vmem:[#allocation6 + $0x18] sm:$0xff] }
   0xd   :  { %53 = vst.msk [vmem:[#allocation2] sm:$0xff] %vm52_vm0, %v212_v0  ;;  %v60_v3 = vld [vmem:[#allocation6] sm:$0xff]  ;;  %v65_v4 = vpack.c.bf16 %v63_v2, %v62_v1  ;;  %v61_v5 = vld [vmem:[#allocation6 + $0x8] sm:$0xff]  ;;  %v57_v7 = vld [vmem:[#allocation3] sm:$0xff]  ;;  %vm66_vm1 = vcmask 261120   ;;  %s213_s24 = smov [#allocation8]  }
   0xe   :  { %54 = vst.msk [vmem:[#allocation2 + $0x8] sm:$0xff] %vm52_vm0, %v212_v0  ;;  %v64_v6 = vpack.c.bf16 %v61_v5, %v60_v3  ;;  %v58_v8 = vld [vmem:[#allocation3 + $0x8] sm:$0xff]  ;;  %v129_v14 = vld [vmem:[%s263_s2] ss:$0 sm:$0xff]  ;;  %s106_s25 = sshll.u32 %s213_s24, 4  ;;  %s108_s28 = sshll.u32 %s264_s3, 4  ;;  %s107_s25 = int_to_ptr.vmem [resolvable:$true] %s106_s25  ;;  %s109_s28 = int_to_ptr.hbm [resolvable:$true] %s108_s28 }
   0xf   :  { %76 = vmatpush.bf16.msra.mxu0 %v65_v4  ;;  %v59_v9 = vpack.c.bf16 %v58_v8, %v57_v7 }
  0x13   :  { %77 = vmatpush.bf16.msra.mxu0 %v64_v6 }
  0x14   :  { %v55_v10 = vld [vmem:[#allocation2] sm:$0xff] }
  0x15   :  { %v56_v13 = vld [vmem:[#allocation2 + $0x8] sm:$0xff] }
  0x16   :  { %122 = vmatmul.msk.bf16.vlgmr.msra.gmra.mxu0 %vm66_vm1, %v59_v9 }
  0x93   :  { %v79_v11 = vpop.f32.mrf.mxu0 }
  0x94   :  { %v84_v12 = vadd.f32 %v79_v11, %v55_v10 }
  0x96   :  { %87 = vst.msk [vmem:[#allocation2] sm:$0xff] %vm52_vm0, %v84_v12 }
  0x9b   :  { %v81_v15 = vpop.f32.mrf.mxu0 }
  0x9c   :  { %v85_v16 = vadd.f32 %v81_v15, %v56_v13 }
  0x9d   :  { %v92_v17 = vld [vmem:[#allocation2] sm:$0xff] }
  0x9e   :  { %88 = vst.msk [vmem:[#allocation2 + $0x8] sm:$0xff] %vm52_vm0, %v85_v16  ;;  %v98_v18 = vadd.f32 %v129_v14, %v92_v17 }
  0xa0   :  { %100 = vst.msk [vmem:[#allocation8] sm:$0xff] %vm52_vm0, %v98_v18 }
  0xa5   :  { %v93_v19 = vld [vmem:[#allocation2 + $0x8] sm:$0xff] }
  0xa6   :  { %v99_v20 = vadd.f32 %v129_v14, %v93_v19 }
  0xa8   :  { %101 = vst.msk [vmem:[#allocation8 + $0x8] sm:$0xff] %vm52_vm0, %v99_v20 }
  0xa9   :  { %114 = dma.vmem_to_hbm [thread:$0]  %s107_s25, 256, %s109_s28, [#allocation5], %s209_s20, %s209_s20, %s210_s21  }
  0xaa   :  { %206 = dma.done.wait [#allocation5], 256  }
  0xab   :  { %207 = vsyncadd [#allocation5], 4294967040 }
  0xac   :  { %119 = vsyncpa [#allocation4], 1 }
  0xad   :  { %120 = vsyncpa [#allocation7], 1 }
  0xae   :  { %121 = vsyncpa [#allocation5], 1 }

</bundles_post_ra>
